<compile_context>
chip_gen: v7x
topology: tpu7x:2x2x1
jax: 0.10.0
libtpu: 0.0.40
codegen_flags: <defaults>
</compile_context>

<pallas_src>
import math

import jax
import jax.numpy as jnp
from jax.experimental import pallas as pl
from jax.experimental.pallas import tpu as pltpu

MARGIN_M = 0.5
SCALE_S = 64.0

# Margin constants (match the PyTorch buffers cos_m / sin_m / th / mm; the
# module uses the literal 3.14159265, kept here for exact parity).
_COS_M = math.cos(MARGIN_M)
_SIN_M = math.sin(MARGIN_M)
_TH = math.cos(3.14159265 - MARGIN_M)
_MM = math.sin(3.14159265 - MARGIN_M) * MARGIN_M
_EPS = 1e-12          # torch.nn.functional.normalize default eps
_EPS2 = _EPS * _EPS   # compare against squared norm -> rsqrt(max(|v|^2, eps^2))


def _round_up(x, m):
    return ((x + m - 1) // m) * m


def _arc_margin_kernel(x_ref, w_ref, lab_ref, out_ref):
    """One (tb, tc) output tile.

    x_ref:   (tb, Dp)  pre-normalized embeddings (bf16 or f32), resident over j
    w_ref:   (Dp, tc)  pre-normalized, pre-transposed weights, streamed over j
    lab_ref: (tb, 1)   int32 labels (-1 for padded rows)
    out_ref: (tb, tc)  scaled logits
    """
    j = pl.program_id(1)
    tb, tc = out_ref.shape

    # MXU: classes on lanes of the RHS, f32 accumulation. Inputs are already
    # unit-norm so this IS the cosine.
    cosine = jax.lax.dot_general(
        x_ref[...], w_ref[...],
        dimension_numbers=(((1,), (0,)), ((), ())),
        preferred_element_type=jnp.float32)                       # (tb, tc) f32

    # one_hot via iota == (labels - tile_origin): the per-element int add is
    # folded into a (tb, 1) scalar subtract.
    labels_local = lab_ref[...] - j * tc                          # (tb, 1) int32
    one_hot = (jax.lax.broadcasted_iota(jnp.int32, (tb, tc), 1)
               == labels_local)                                   # (tb, tc) bool

    # Label-only margin epilogue: extract the label-column cosine per row
    # (0.0 if the label is not in this C tile -- harmless, the correction is
    # gated by one_hot below), compute sine/phi/threshold on (tb, 1) only.
    cos_lab = jnp.sum(jnp.where(one_hot, cosine, 0.0),
                      axis=-1, keepdims=True)                     # (tb, 1)
    sine_lab = jnp.sqrt(1.0 - jnp.minimum(cos_lab * cos_lab, 1.0))
    phi_lab = cos_lab * _COS_M - sine_lab * _SIN_M
    phi_lab = jnp.where(cos_lab > _TH, phi_lab, cos_lab - _MM)    # (tb, 1)

    # output = s * (one_hot * phi + (1 - one_hot) * cosine)
    out_ref[...] = (jnp.where(one_hot, phi_lab, cosine)
                    * SCALE_S).astype(out_ref.dtype)


def arc_margin_product(embeddings, weight, labels, *, tb=None, tc=None,
                       use_bf16_matmul=True, out_dtype=jnp.float32):
    """ArcMarginProduct.forward(embeddings, labels) with given weight.

    embeddings: (B, D) float32
    weight:     (C, D) float32  (out_features, in_features)
    labels:     (B,)   int32
    returns:    (B, C) out_dtype scaled logits
    """
    B, D = embeddings.shape
    C, D2 = weight.shape
    assert D == D2, "embedding dim must match weight in_features"

    x = embeddings.astype(jnp.float32)
    w = weight.astype(jnp.float32)

    # --- One-time pre-processing in the wrapper (not per grid step) --------
    # F.normalize: v / max(||v||, eps). Padded zero rows stay exactly zero.
    inv_x = jax.lax.rsqrt(
        jnp.maximum(jnp.sum(x * x, axis=-1, keepdims=True), _EPS2))
    inv_w = jax.lax.rsqrt(
        jnp.maximum(jnp.sum(w * w, axis=-1, keepdims=True), _EPS2))
    mat_dtype = jnp.bfloat16 if use_bf16_matmul else jnp.float32
    x_n = (x * inv_x).astype(mat_dtype)          # (B, D)
    w_t = (w * inv_w).T.astype(mat_dtype)        # (D, C): classes on lanes

    # --- Tile sizes ---------------------------------------------------------
    # tb large so the weight matrix streams (close to) once; multiple of 8
    # (sublanes).  tc multiple of 128 (lane-dense output -> unmasked vst).
    if tb is None:
        tb = min(512, _round_up(B, 8))
    if tc is None:
        tc = min(1024, _round_up(C, 128))

    Bp = _round_up(B, tb)
    Cp = _round_up(C, tc)
    Dp = _round_up(D, 128)   # contraction dim maps to lanes in the MXU

    if Bp != B or Dp != D:
        x_n = jnp.pad(x_n, ((0, Bp - B), (0, Dp - D)))
    if Cp != C or Dp != D:
        w_t = jnp.pad(w_t, ((0, Dp - D), (0, Cp - C)))

    labels_2d = labels.astype(jnp.int32).reshape(B, 1)
    if Bp != B:
        # -1 never matches a (non-negative) class column -> padded rows are
        # plain scaled cosine (all zeros) and get sliced off anyway.
        labels_2d = jnp.pad(labels_2d, ((0, Bp - B), (0, 0)),
                            constant_values=-1)

    grid = (Bp // tb, Cp // tc)
    mat_bytes = jnp.dtype(mat_dtype).itemsize
    out_bytes = jnp.dtype(out_dtype).itemsize

    # --- VMEM budget (explicit; re-derived for the larger tiles) -----------
    #   x tile:   double-buffered by the pipeline even though block-resident
    #   w tile:   streamed + double-buffered
    #   labels:   (tb, 1) pads to (tb, 128) lanes
    #   out tile: double-buffered
    #   epilogue temporaries: ~3 live (tb, tc) f32/int32 arrays (cosine, iota,
    #   select result) before the store
    vmem_estimate = (
        2 * tb * Dp * mat_bytes
        + 2 * Dp * tc * mat_bytes
        + 2 * tb * 128 * 4
        + 2 * tb * tc * out_bytes
        + 3 * tb * tc * 4
        + (2 << 20))                                   # headroom
    # Cap below v7x's 64 MiB physical VMEM; default tiles land ~16 MiB.
    vmem_limit = int(min(max(vmem_estimate, 16 << 20), 60 << 20))

    cost = pl.CostEstimate(
        flops=int(2 * Bp * Cp * Dp + 3 * Bp * Cp + 6 * Bp * grid[1]),
        transcendentals=int(Bp * grid[1]),
        bytes_accessed=int(mat_bytes * (Bp * Dp + grid[0] * Cp * Dp)
                           + out_bytes * Bp * Cp + 4 * Bp),
    )

    out = pl.pallas_call(
        _arc_margin_kernel,
        out_shape=jax.ShapeDtypeStruct((Bp, Cp), out_dtype),
        grid=grid,
        in_specs=[
            pl.BlockSpec((tb, Dp), lambda i, j: (i, 0)),   # x tile, resident over j
            pl.BlockSpec((Dp, tc), lambda i, j: (0, j)),   # weight tile, streamed
            pl.BlockSpec((tb, 1), lambda i, j: (i, 0)),    # labels tile
        ],
        out_specs=pl.BlockSpec((tb, tc), lambda i, j: (i, j)),
        compiler_params=pltpu.CompilerParams(
            dimension_semantics=("parallel", "parallel"),
            vmem_limit_bytes=vmem_limit),
        cost_estimate=cost,
    )(x_n, w_t, labels_2d)

    return out[:B, :C]


def _reference(embeddings, weight, labels, *, use_bf16_matmul=True):
    """Pure-JAX reference mirroring the PyTorch module (and kernel numerics)."""
    x = embeddings.astype(jnp.float32)
    w = weight.astype(jnp.float32)
    inv_x = jax.lax.rsqrt(
        jnp.maximum(jnp.sum(x * x, axis=-1, keepdims=True), _EPS2))
    inv_w = jax.lax.rsqrt(
        jnp.maximum(jnp.sum(w * w, axis=-1, keepdims=True), _EPS2))
    x_n = x * inv_x
    w_n = w * inv_w
    if use_bf16_matmul:
        cosine = jnp.dot(x_n.astype(jnp.bfloat16),
                         w_n.astype(jnp.bfloat16).T,
                         preferred_element_type=jnp.float32)
    else:
        cosine = jnp.dot(x_n, w_n.T, preferred_element_type=jnp.float32)
    sine = jnp.sqrt(1.0 - jnp.minimum(cosine ** 2, 1.0))
    phi = cosine * _COS_M - sine * _SIN_M
    phi = jnp.where(cosine > _TH, phi, cosine - _MM)
    one_hot = jax.nn.one_hot(labels, weight.shape[0], dtype=cosine.dtype)
    return (one_hot * phi + (1.0 - one_hot) * cosine) * SCALE_S


if __name__ == "__main__":
    # --- Test 1: module-sized toy shapes, exact f32 path --------------------
    B, D, C = 8, 32, 16
    key = jax.random.PRNGKey(0)
    k_emb, k_w, k_lab = jax.random.split(key, 3)

    embeddings = jax.random.normal(k_emb, (B, D), dtype=jnp.float32)
    limit = math.sqrt(6.0 / (D + C))      # xavier_uniform bound for (C, D)
    weight = jax.random.uniform(
        k_w, (C, D), dtype=jnp.float32, minval=-limit, maxval=limit)
    labels = jax.random.randint(k_lab, (B,), 0, C, dtype=jnp.int32)

    out = arc_margin_product(embeddings, weight, labels,
                             use_bf16_matmul=False)
    jax.block_until_ready(out)
    ref = _reference(embeddings, weight, labels, use_bf16_matmul=False)
    assert out.shape == (B, C)
    assert jnp.allclose(out, ref, atol=1e-4, rtol=1e-5), "mismatch (f32 path)"

    # --- Test 2: multi-tile grid, bf16 fast path (exercises padding in B/C/D
    # and the per-tile label offset) -----------------------------------------
    B2, D2, C2 = 24, 64, 300
    k1, k2, k3 = jax.random.split(jax.random.PRNGKey(1), 3)
    emb2 = jax.random.normal(k1, (B2, D2), dtype=jnp.float32)
    w2 = 0.1 * jax.random.normal(k2, (C2, D2), dtype=jnp.float32)
    lab2 = jax.random.randint(k3, (B2,), 0, C2, dtype=jnp.int32)

    out2 = arc_margin_product(emb2, w2, lab2, tb=8, tc=128)   # grid = (3, 3)
    jax.block_until_ready(out2)
    ref2 = _reference(emb2, w2, lab2, use_bf16_matmul=True)
    assert out2.shape == (B2, C2)
    assert jnp.allclose(out2, ref2, atol=1e-2, rtol=1e-3), "mismatch (tiled bf16)"

    print("KERNEL_OK")
</pallas_src>

<mosaic_0001>
module attributes {stable_mosaic.version = 11 : i64} {
  func.func @_arc_margin_kernel(%arg0: i32, %arg1: i32, %arg2: memref<8x128xf32, #tpu.memory_space<vmem>>, %arg3: memref<128x128xf32, #tpu.memory_space<vmem>>, %arg4: memref<8x1xi32, #tpu.memory_space<vmem>>, %arg5: memref<8x128xf32, #tpu.memory_space<vmem>>) attributes {dimension_semantics = [#tpu.dimension_semantics<parallel>, #tpu.dimension_semantics<parallel>], iteration_bounds = array<i64: 1, 1>, scalar_prefetch = 0 : i64, scratch_operands = 0 : i64, tpu.core_type = #tpu.core_type<tc>, window_params = [{transform_indices = @transform_0, window_bounds = array<i64: 8, 128>}, {transform_indices = @transform_1, window_bounds = array<i64: 128, 128>}, {transform_indices = @transform_2, window_bounds = array<i64: 8, 1>}, {transform_indices = @transform_3, window_bounds = array<i64: 8, 128>}]} {
    %c0 = arith.constant 0 : index
    %c0_0 = arith.constant 0 : index
    %0 = vector.load %arg2[%c0, %c0_0] : memref<8x128xf32, #tpu.memory_space<vmem>>, vector<8x128xf32>
    %c0_1 = arith.constant 0 : index
    %c0_2 = arith.constant 0 : index
    %1 = vector.load %arg3[%c0_1, %c0_2] : memref<128x128xf32, #tpu.memory_space<vmem>>, vector<128x128xf32>
    %cst = arith.constant dense<0.000000e+00> : vector<8x128xf32>
    %2 = tpu.matmul %0, %1, %cst {dimension_numbers = #tpu.dot_dimension_numbers<[1], [0], [0], [1], [0, 0, 1, 1], [], []>} : vector<8x128xf32>, vector<128x128xf32>, vector<8x128xf32> -> vector<8x128xf32>
    %c0_3 = arith.constant 0 : index
    %c0_4 = arith.constant 0 : index
    %3 = vector.load %arg4[%c0_3, %c0_4] : memref<8x1xi32, #tpu.memory_space<vmem>>, vector<8x1xi32>
    %c128_i32 = arith.constant 128 : i32
    %4 = arith.muli %arg1, %c128_i32 : i32
    %5 = vector.broadcast %4 : i32 to vector<8x1xi32>
    %6 = arith.subi %3, %5 : vector<8x1xi32>
    %7 = tpu.iota {dimensions = array<i32: 1>} : vector<8x128xi32>
    %8 = vector.broadcast %6 : vector<8x1xi32> to vector<8x128xi32>
    %9 = arith.cmpi eq, %7, %8 : vector<8x128xi32>
    %cst_5 = arith.constant 0.000000e+00 : f32
    %10 = vector.broadcast %cst_5 : f32 to vector<8x128xf32>
    %11 = arith.select %9, %2, %10 : vector<8x128xi1>, vector<8x128xf32>
    %cst_6 = arith.constant dense<0.000000e+00> : vector<8xf32>
    %12 = vector.multi_reduction <add>, %11, %cst_6 [1] : vector<8x128xf32> to vector<8xf32>
    %13 = vector.shape_cast %12 : vector<8xf32> to vector<8x1xf32>
    %14 = arith.mulf %13, %13 : vector<8x1xf32>
    %cst_7 = arith.constant 1.000000e+00 : f32
    %15 = vector.broadcast %cst_7 : f32 to vector<8x1xf32>
    %16 = arith.minimumf %14, %15 : vector<8x1xf32>
    %cst_8 = arith.constant 1.000000e+00 : f32
    %17 = vector.broadcast %cst_8 : f32 to vector<8x1xf32>
    %18 = arith.subf %17, %16 : vector<8x1xf32>
    %19 = math.sqrt %18 : vector<8x1xf32>
    %cst_9 = arith.constant 0.87758255 : f32
    %20 = vector.broadcast %cst_9 : f32 to vector<8x1xf32>
    %21 = arith.mulf %13, %20 : vector<8x1xf32>
    %cst_10 = arith.constant 0.47942555 : f32
    %22 = vector.broadcast %cst_10 : f32 to vector<8x1xf32>
    %23 = arith.mulf %19, %22 : vector<8x1xf32>
    %24 = arith.subf %21, %23 : vector<8x1xf32>
    %cst_11 = arith.constant -0.87758255 : f32
    %25 = vector.broadcast %cst_11 : f32 to vector<8x1xf32>
    %26 = arith.cmpf ogt, %13, %25 : vector<8x1xf32>
    %cst_12 = arith.constant 0.239712775 : f32
    %27 = vector.broadcast %cst_12 : f32 to vector<8x1xf32>
    %28 = arith.subf %13, %27 : vector<8x1xf32>
    %29 = arith.select %26, %24, %28 : vector<8x1xi1>, vector<8x1xf32>
    %30 = vector.shape_cast %29 : vector<8x1xf32> to vector<8x1xf32>
    %31 = vector.broadcast %30 : vector<8x1xf32> to vector<8x128xf32>
    %32 = arith.select %9, %31, %2 : vector<8x128xi1>, vector<8x128xf32>
    %cst_13 = arith.constant 6.400000e+01 : f32
    %33 = vector.broadcast %cst_13 : f32 to vector<8x128xf32>
    %34 = arith.mulf %32, %33 : vector<8x128xf32>
    %c0_14 = arith.constant 0 : index
    %c0_15 = arith.constant 0 : index
    %35 = vector.load %arg5[%c0_14, %c0_15] : memref<8x128xf32, #tpu.memory_space<vmem>>, vector<8x128xf32>
    tpu.vector_store %arg5[%c0_14, %c0_15], %34 {strides = array<i32>} : memref<8x128xf32, #tpu.memory_space<vmem>>, vector<8x128xf32>,
    return
  }
  func.func @transform_0(%arg0: i32, %arg1: i32) -> (i32, i32) {
    %c0_i32 = arith.constant 0 : i32
    %c0_i32_0 = arith.constant 0 : i32
    return %arg0, %c0_i32 : i32, i32
  }
  func.func @transform_1(%arg0: i32, %arg1: i32) -> (i32, i32) {
    %c0_i32 = arith.constant 0 : i32
    %c0_i32_0 = arith.constant 0 : i32
    return %c0_i32, %arg1 : i32, i32
  }
  func.func @transform_2(%arg0: i32, %arg1: i32) -> (i32, i32) {
    %c0_i32 = arith.constant 0 : i32
    %c0_i32_0 = arith.constant 0 : i32
    return %arg0, %c0_i32 : i32, i32
  }
  func.func @transform_3(%arg0: i32, %arg1: i32) -> (i32, i32) {
    %c0_i32 = arith.constant 0 : i32
    return %arg0, %arg1 : i32, i32
  }
}

</mosaic_0001>

<bundles_post_ra>
// kernel: tpu_custom_call.1
= control target key start
LH: loop header
LB: loop body
LE: loop exit
PB: predicated region body
PF: predicated region fallthrough
CT: control target
= control target key end

     0   :  { %8 = vsyncpa [#allocation3], 0  ;;  %s359_s0 = inlined_call_operand.vmem [shape: f32[8,128], index: 0, kind: input, shape index: {}]   ;;  %s360_s1 = inlined_call_operand.hbm [shape: f32[128,128], index: 1, kind: input, shape index: {}]   ;;  %s361_s2 = inlined_call_operand.vmem [shape: s32[8,1], index: 2, kind: input, shape index: {}]   ;;  %s362_s3 = inlined_call_operand.hbm [shape: f32[8,128], index: 3, kind: output, shape index: {}]  }
   0x1   :  { %9 = vsyncpa [#allocation4], 0  ;;  %s299_s12 = smov [#allocation2]   ;;  %s251_s16 = scalar_lea.hbm %s360_s1, 2048 }
   0x2   :  { %s17_s13 = sshll.u32 %s299_s12, 4  ;;  %p252_p0 = scmp.ne.s32.totalorder %s360_s1, %s251_s16  ;;  %s18_s13 = int_to_ptr.vmem [resolvable:$true] %s17_s13 }
   0x3   :  { %p255_p1 = scmp.lt.u32.totalorder %s251_s16, %s360_s1 }
   0x5   :  { %p257_p2 = pnand %p255_p1, %p252_p0 }
   0x7   :  { %260 = shalt.err (!%p257_p2)
}
   0x8   :  { %s261_s21 = scalar_lea.vmem %s18_s13, 2048  ;;  %p266_p4 = scmp.lt.s32.totalorder %s18_s13, %s18_s13 }
   0x9   :  { %p262_p3 = scmp.ne.s32.totalorder %s18_s13, %s261_s21  ;;  %p267_p5 = scmp.lt.s32.totalorder %s261_s21, %s261_s21 }
   0xb   :  { %p268_p6 = por %p267_p5, %p266_p4 }
   0xd   :  { %p269_p7 = pnand %p268_p6, %p262_p3 }
   0xf   :  { %272 = shalt.err (!%p269_p7)
}
  0x10   :  { %s300_s22 = smov 128   ;;  %s301_s23 = smov 8  }
  0x11   :  { %23 = dma.hbm_to_vmem [thread:$0]  %s360_s1, 2048, %s18_s13, [#allocation3], %s300_s22, %s300_s22, %s301_s23  }
  0x12   :  { %295 = dma.done.wait [#allocation3], 2048  }
  0x13   :  { %296 = vsyncadd [#allocation3], 4294965248  ;;  %v302_v0 = vmov 0.0|0.0   ;;  %vm303_vm0 = vmmov 0   ;;  %v304_v1 = vmov 0.0   ;;  %v305_v2 = vmov 0  }
  0x14   :  { %216 = vmatprep.subr.bf16.mxu0 %v302_v0  ;;  %213 = vmatprep.mubr.msk.f32.mxu0 %vm303_vm0, %v304_v1  ;;  %v30_v3 = vld [vmem:[#allocation2] sm:$0xff]  ;;  %v31_v4 = vld [vmem:[#allocation2 + $0x8] sm:$0xff]  ;;  %v32_v5 = vld [vmem:[#allocation2 + $0x10] sm:$0xff]  ;;  %v120_v29 = vlaneseq }
  0x15   :  { %248 = vset.pattern.permute.xlu0 %v305_v2  ;;  %v217_v6 = vpack.c.bf16 %v31_v4, %v30_v3  ;;  %v33_v7 = vld [vmem:[#allocation2 + $0x18] sm:$0xff]  ;;  %v34_v9 = vld [vmem:[#allocation2 + $0x20] sm:$0xff]  ;;  %v35_v10 = vld [vmem:[#allocation2 + $0x28] sm:$0xff] }
  0x16   :  { %v220_v8 = vpack.c.bf16 %v33_v7, %v32_v5  ;;  %v116_v11 = vld [vmem:[%s361_s2] sm:$0xff]  ;;  %v223_v12 = vpack.c.bf16 %v35_v10, %v34_v9  ;;  %v36_v13 = vld [vmem:[#allocation2 + $0x30] sm:$0xff]  ;;  %v37_v14 = vld [vmem:[#allocation2 + $0x38] sm:$0xff]  ;;  %v121_v30 = vand.u32 127, %v120_v29 }
  0x17   :  { %218 = vmatpush3.bf16.msra.mxu0 %v217_v6  ;;  %123 = vperm.xlu0 %248, %v116_v11   ;;  %v226_v15 = vpack.c.bf16 %v37_v14, %v36_v13  ;;  %v38_v16 = vld [vmem:[#allocation2 + $0x40] sm:$0xff]  ;;  %v39_v17 = vld [vmem:[#allocation2 + $0x48] sm:$0xff]  ;;  %v40_v19 = vld [vmem:[#allocation2 + $0x50] sm:$0xff] }
  0x18   :  { %219 = vmatprep.subr.bf16.mxu0 %v302_v0  ;;  %v229_v18 = vpack.c.bf16 %v39_v17, %v38_v16  ;;  %v41_v20 = vld [vmem:[#allocation2 + $0x58] sm:$0xff]  ;;  %v42_v22 = vld [vmem:[#allocation2 + $0x60] sm:$0xff]  ;;  %v43_v23 = vld [vmem:[#allocation2 + $0x68] sm:$0xff] }
  0x19   :  { %v232_v21 = vpack.c.bf16 %v41_v20, %v40_v19  ;;  %v235_v24 = vpack.c.bf16 %v43_v23, %v42_v22  ;;  %v44_v25 = vld [vmem:[#allocation2 + $0x70] sm:$0xff]  ;;  %v45_v26 = vld [vmem:[#allocation2 + $0x78] sm:$0xff]  ;;  %v29_v28 = vld [vmem:[%s359_s0] sm:$0xff]  ;;  %s306_s0 = smov [#allocation5]  }
  0x1a   :  { %v238_v27 = vpack.c.bf16 %v45_v26, %v44_v25  ;;  %s154_s28 = sshll.u32 %s306_s0, 4  ;;  %s155_s28 = int_to_ptr.vmem [resolvable:$true] %s154_s28 }
  0x1b   :  { %221 = vmatpush3.bf16.msra.mxu0 %v220_v8  ;;  %s273_s29 = scalar_lea.vmem %s155_s28, 128  ;;  %p278_p9 = scmp.lt.s32.totalorder %s155_s28, %s155_s28 }
  0x1c   :  { %222 = vmatprep.subr.bf16.mxu0 %v302_v0  ;;  %p274_p8 = scmp.ne.s32.totalorder %s155_s28, %s273_s29  ;;  %p279_p10 = scmp.lt.s32.totalorder %s273_s29, %s273_s29 }
  0x1e   :  { %p280_p11 = por %p279_p10, %p278_p9 }
  0x1f   :  { %224 = vmatpush3.bf16.msra.mxu0 %v223_v12 }
  0x20   :  { %225 = vmatprep.subr.bf16.mxu0 %v302_v0  ;;  %p281_p12 = pnand %p280_p11, %p274_p8 }
  0x23   :  { %227 = vmatpush3.bf16.msra.mxu0 %v226_v15 }
  0x24   :  { %228 = vmatprep.subr.bf16.mxu0 %v302_v0 }
  0x27   :  { %230 = vmatpush3.bf16.msra.mxu0 %v229_v18 }
  0x28   :  { %231 = vmatprep.subr.bf16.mxu0 %v302_v0 }
  0x2b   :  { %233 = vmatpush3.bf16.msra.mxu0 %v232_v21 }
  0x2c   :  { %234 = vmatprep.subr.bf16.mxu0 %v302_v0 }
  0x2f   :  { %236 = vmatpush3.bf16.msra.mxu0 %v235_v24 }
  0x30   :  { %237 = vmatprep.subr.bf16.mxu0 %v302_v0 }
  0x33   :  { %239 = vmatpush3.bf16.msra.mxu0 %v238_v27 }
  0x36   :  { %214 = vmatmul.mubr.f32.vlgmr.msra.gmra.mrb[0].mxu0 %v29_v28 }
  0x96   :  { %v124_v31 = vpop.permute.xlu0 %123 }
  0x97   :  { %vm125_vm1 = vcmp.eq.s32.totalorder %v121_v30, %v124_v31 }
 0x109   :  { %v112_v32 = vpop.f32.mrb[0].mxu0 }
 0x10a   :  { %v215_v33 = vpop.f32.mrb[1].mxu0  ;;  %v126_v34 = vsel %vm125_vm1, %v112_v32, 0.0 }
 0x10b   :  { %127 = vadd.xlane.f32.xlu0 %v126_v34 }
 0x198   :  { %v128_v35 = vpop.xlane.xlu0 %127 }
 0x199   :  { %v129_v36 = vmul.f32 %v128_v35, %v128_v35  ;;  %v139_v44 = vmul.f32 0.87758255, %v128_v35  ;;  %v163_v47 = vadd.f32 -0.23971277, %v128_v35  ;;  %vm142_vm4 = vcmp.gt.f32.partialorder %v128_v35, -0.87758255 }
 0x19b   :  { %v130_v37 = vmin.f32 %v129_v36, 1.0 }
 0x19d   :  { %v131_v38 = vsub.f32 1.0, %v130_v37 }
 0x19f   :  { %249 = vrsqrt.f32 %v131_v38  ;;  %vm134_vm2 = vcmp.eq.f32.partialorder %v131_v38, inf  ;;  %v137_v41 = vand.u32 2147483648, %v131_v38  ;;  %vm136_vm3 = vcmp.eq.f32.partialorder %v131_v38, 0.0 }
 0x1a9   :  { %v250_v39 = vpop.eup %249 }
 0x1aa   :  { %v133_v40 = vmul.f32 %v250_v39, %v131_v38 }
 0x1ac   :  { %v135_v42 = vsel %vm134_vm2, %v131_v38, %v133_v40 }
 0x1ad   :  { %v138_v43 = vsel %vm136_vm3, %v137_v41, %v135_v42 }
 0x1ae   :  { %v140_v45 = vmul.f32 0.47942555, %v138_v43 }
 0x1b0   :  { %v141_v46 = vsub.f32 %v139_v44, %v140_v45 }
 0x1b2   :  { %v144_v48 = vsel %vm142_vm4, %v141_v46, %v163_v47 }
 0x1b3   :  { %v145_v49 = vsel %vm125_vm1, %v144_v48, %v112_v32 }
 0x1b4   :  { %v146_v50 = vmul.f32 64.0, %v145_v49 }
 0x1b6   :  { %147 = vst [vmem:[#allocation5] sm:$0xff] %v146_v50 }
 0x1b7   :  { %284 = shalt.err (!%p281_p12)
}
 0x1b8   :  { %s285_s5 = scalar_lea.hbm %s362_s3, 128 }
 0x1b9   :  { %p286_p13 = scmp.ne.s32.totalorder %s362_s3, %s285_s5  ;;  %p289_p0 = scmp.lt.u32.totalorder %s285_s5, %s362_s3 }
 0x1bb   :  { %p291_p1 = pnand %p289_p0, %p286_p13 }
 0x1bd   :  { %294 = shalt.err (!%p291_p1)
}
 0x1be   :  { %157 = dma.vmem_to_hbm [thread:$0]  %s155_s28, 128, %s362_s3, [#allocation4]  }
 0x1bf   :  { %297 = dma.done.wait [#allocation4], 128  }
 0x1c0   :  { %298 = vsyncadd [#allocation4], 4294967168 }
 0x1c1   :  { %161 = vsyncpa [#allocation3], 1 }
 0x1c2   :  { %162 = vsyncpa [#allocation4], 1 }

</bundles_post_ra>
